<compile_context>
chip_gen: v6e
topology: v6e:2x2x1
jax: 0.10.0
libtpu: 0.0.40
codegen_flags: <defaults>
</compile_context>

<pallas_src>
import functools

import jax
import jax.numpy as jnp
from jax import lax
from jax.experimental import pallas as pl
from jax.experimental.pallas import tpu as pltpu


# ---------------------------------------------------------------------------
# Fused Pallas kernel: one batch tile (B_TILE images merged into lanes) per step
# ---------------------------------------------------------------------------
def _fused_shift_conv_kernel(x_ref, w_ref, o_ref, *, shifts, roll_amounts, H, W):
    """Fused shift-gather + grouped 1x1 conv, one MXU matmul per step.

    x_ref: (C, L)      channel-major slab; L = B_TILE*H*W (batch merged in lanes)
    w_ref: (oup, S*C)  packed block-diagonal 1x1-conv weights
    o_ref: (oup, L)    output slab, lane-dense last dim (multiple of 128)
    """
    x = x_ref[...]                                    # (C, L)
    L = x.shape[1]
    HW = H * W

    # Per-lane position inside its image (batch merged into lanes):
    #   w_rem = column index in row, hw_rem = flat pixel index in image.
    # (only remainders by compile-time constants; no vector division needed)
    q = lax.broadcasted_iota(jnp.int32, (1, L), 1)
    w_rem = q % W
    hw_rem = q % HW

    slabs = []
    for (dh, dw), amt in zip(shifts, roll_amounts):   # static unroll, S is small
        # shifted[p] = x[(p + dh*W + dw) mod L]; within an image this is the
        # (h+dh, w+dw) source pixel, wraps across row/image seams are masked.
        shifted = pltpu.roll(x, shift=amt, axis=1) if amt != 0 else x
        conds = []
        if dh == -1:
            conds.append(hw_rem >= W)                 # h >= 1
        elif dh == 1:
            conds.append(hw_rem < HW - W)             # h <= H-2
        if dw == -1:
            conds.append(w_rem >= 1)                  # w >= 1
        elif dw == 1:
            conds.append(w_rem <= W - 2)              # w <= W-2
        if conds:
            m = conds[0]
            for c in conds[1:]:
                m = jnp.logical_and(m, c)
            # select (not multiply): wrapped / padded sources become exact 0,
            # matching true zero padding even for NaN/Inf sources.
            shifted = jnp.where(m, shifted, jnp.zeros_like(shifted))
        slabs.append(shifted)

    cat = jnp.concatenate(slabs, axis=0)              # (S*C, L)
    acc = jnp.dot(w_ref[...], cat, preferred_element_type=jnp.float32)
    o_ref[...] = acc.astype(o_ref.dtype)


# ---------------------------------------------------------------------------
# Forward wrapper (layout plumbing + KB-scale weight packing outside Pallas)
# ---------------------------------------------------------------------------
def any_module_d_forward(x, weights, cfg, *, batch_tile=256):
    """x: (N, C, H, W) NCHW float32.  weights[k]: (F_k, C*len(cfg[k]), 1, 1).
    Returns (N, sum_k F_k, H, W) NCHW, matching AnyModule_d (stride=1).
    (PyTorch uses x.size(2) for both spatial extents, i.e. assumes H == W;
    this generalizes naturally by using H and W for their own axes.)"""
    N, C, H, W = x.shape
    HW = H * W
    f_sizes = [int(wk.shape[0]) for wk in weights]
    oup = sum(f_sizes)

    # Flat static list of (group, within-group index, dh, dw) shifts.
    flat = [(k, i, a - 1, b - 1)
            for k, group in enumerate(cfg)
            for i, (a, b) in enumerate(group)]
    S = len(flat)

    # ---- batch tiling ------------------------------------------------------
    b_tile = max(1, min(N, batch_tile))
    if (b_tile * HW) % 128 != 0:
        # keep the output lane dim unmasked-dense: fall back to one full block
        b_tile = N
    n_pad = (-N) % b_tile
    N_pad = N + n_pad
    num_tiles = N_pad // b_tile
    L = b_tile * HW

    # ---- layout plumbing: NCHW -> channel-major, batch merged into lanes ---
    x_cm = jnp.transpose(x, (1, 0, 2, 3)).reshape(C, N * HW)
    if n_pad:
        x_cm = jnp.pad(x_cm, ((0, 0), (0, n_pad * HW)))

    # ---- pack per-shift 1x1 weights into one (oup, S*C) matrix -------------
    # Column block s*C:(s+1)*C holds shift s's weights in rows r0:r0+F_k (its
    # group's output channels) and zeros elsewhere, so a single matmul realizes
    # both the per-group channel concat and the channel-concat of group outputs.
    w_cols = []
    for (k, i, dh, dw) in flat:
        r0 = sum(f_sizes[:k])
        wk = weights[k].reshape(f_sizes[k], len(cfg[k]) * C)   # (F_k, len*C)
        blk = jnp.zeros((oup, C), x.dtype)
        blk = blk.at[r0:r0 + f_sizes[k], :].set(
            wk[:, i * C:(i + 1) * C].astype(x.dtype))
        w_cols.append(blk)
    w2d = jnp.concatenate(w_cols, axis=1)                       # (oup, S*C)

    shifts = tuple((dh, dw) for (_, _, dh, dw) in flat)
    roll_amounts = tuple(int((-(dh * W + dw)) % L) for (dh, dw) in shifts)

    kernel = functools.partial(_fused_shift_conv_kernel,
                               shifts=shifts, roll_amounts=roll_amounts,
                               H=H, W=W)

    # VMEM budget: double-buffered in/out blocks + in-kernel temporaries
    # (S rolled/masked slabs + concatenated slab + f32 accumulator) + headroom,
    # capped at v7x's 32 MiB scoped default.
    blk_bytes = (C + oup) * L * 4
    tmp_bytes = (2 * S * C + 2 * oup + C) * L * 4
    vmem_bytes = int(min(2 * blk_bytes + tmp_bytes + (4 << 20), 32 << 20))

    out_cm = pl.pallas_call(
        kernel,
        out_shape=jax.ShapeDtypeStruct((oup, N_pad * HW), x.dtype),
        grid_spec=pltpu.PrefetchScalarGridSpec(
            num_scalar_prefetch=0,
            grid=(num_tiles,),
            in_specs=[
                pl.BlockSpec((C, L), lambda n: (0, n)),
                # tiny weight table: constant block index -> fetched once
                pl.BlockSpec((oup, S * C), lambda n: (0, 0)),
            ],
            out_specs=pl.BlockSpec((oup, L), lambda n: (0, n)),
        ),
        compiler_params=pltpu.CompilerParams(
            dimension_semantics=("parallel",),   # shard batch tiles over v7x's 2 TCs
            vmem_limit_bytes=vmem_bytes,
        ),
    )(x_cm, w2d)

    out = out_cm[:, :N * HW].reshape(oup, N, H, W)
    return jnp.transpose(out, (1, 0, 2, 3))             # back to NCHW


# ---------------------------------------------------------------------------
# Pure-JAX reference (for the correctness check)
# ---------------------------------------------------------------------------
def any_module_d_reference(x, weights, cfg):
    N, C, H, W = x.shape
    xx = jnp.pad(x, ((0, 0), (0, 0), (1, 1), (1, 1)))
    outs = []
    for k in range(len(cfg)):
        slabs = [xx[:, :, a:a + H, b:b + W] for (a, b) in cfg[k]]
        stacked = jnp.concatenate(slabs, axis=1)        # (N, C*len, H, W)
        wk = weights[k][:, :, 0, 0]                     # (F, C*len)
        outs.append(jnp.einsum("nchw,fc->nfhw", stacked, wk))
    return jnp.concatenate(outs, axis=1)


# ---------------------------------------------------------------------------
if __name__ == "__main__":
    # Small shapes consistent with the module.
    N, C, H, W = 2, 4, 16, 16
    oup = 8
    # cfg: list of groups; each group is a list of (dy, dx) offsets in {0,1,2}
    # (pad=1 on each side, so offsets 0..2 are valid).
    cfg = [
        [(0, 0), (1, 1), (2, 2)],   # group 0: 3 shifts -> Conv2d(C*3, oup//2)
        [(0, 1), (1, 0)],           # group 1: 2 shifts -> Conv2d(C*2, oup//2)
    ]
    divide = len(cfg)
    F = oup // divide

    key = jax.random.PRNGKey(0)
    kx, k0, k1 = jax.random.split(key, 3)
    x = jax.random.normal(kx, (N, C, H, W), dtype=jnp.float32)

    # Conv2d(inp*len(cfg[k]), oup//divide, 1, 1, bias=False) weights.
    weights = [
        0.1 * jax.random.normal(k0, (F, C * len(cfg[0]), 1, 1), dtype=jnp.float32),
        0.1 * jax.random.normal(k1, (F, C * len(cfg[1]), 1, 1), dtype=jnp.float32),
    ]

    fwd = jax.jit(functools.partial(any_module_d_forward, cfg=cfg))
    out = jax.block_until_ready(fwd(x, weights))

    ref = any_module_d_reference(x, weights, cfg)
    assert out.shape == (N, oup, H, W), out.shape
    assert jnp.allclose(out, ref, atol=1e-4, rtol=1e-4), "mismatch vs reference"

    print("KERNEL_OK")
</pallas_src>

<mosaic_0001>
module attributes {stable_mosaic.version = 11 : i64} {
  func.func @_fused_shift_conv_kernel(%arg0: i32, %arg1: memref<4x512xf32, #tpu.memory_space<vmem>>, %arg2: memref<8x20xf32, #tpu.memory_space<vmem>>, %arg3: memref<8x512xf32, #tpu.memory_space<vmem>>) attributes {dimension_semantics = [#tpu.dimension_semantics<parallel>], iteration_bounds = array<i64: 1>, scalar_prefetch = 0 : i64, scratch_operands = 0 : i64, tpu.core_type = #tpu.core_type<tc>, window_params = [{transform_indices = @transform_0, window_bounds = array<i64: 4, 512>}, {pipeline_mode = #tpu.pipeline_mode<synchronous>, transform_indices = @transform_1, window_bounds = array<i64: 8, 20>}, {transform_indices = @transform_2, window_bounds = array<i64: 8, 512>}]} {
    %c0 = arith.constant 0 : index
    %c0_0 = arith.constant 0 : index
    %0 = vector.load %arg1[%c0, %c0_0] : memref<4x512xf32, #tpu.memory_space<vmem>>, vector<4x512xf32>
    %1 = tpu.iota {dimensions = array<i32: 1>} : vector<1x512xi32>
    %c16_i32 = arith.constant 16 : i32
    %c0_i32 = arith.constant 0 : i32
    %2 = arith.cmpi eq, %c16_i32, %c0_i32 : i32
    %c1_i32 = arith.constant 1 : i32
    %3 = arith.select %2, %c1_i32, %c16_i32 : i32
    %4 = vector.broadcast %3 : i32 to vector<1x512xi32>
    %5 = arith.remsi %1, %4 : vector<1x512xi32>
    %c0_i32_1 = arith.constant 0 : i32
    %6 = vector.broadcast %c0_i32_1 : i32 to vector<1x512xi32>
    %7 = arith.cmpi ne, %5, %6 : vector<1x512xi32>
    %c0_i32_2 = arith.constant 0 : i32
    %8 = vector.broadcast %c0_i32_2 : i32 to vector<1x512xi32>
    %9 = arith.cmpi slt, %5, %8 : vector<1x512xi32>
    %c0_i32_3 = arith.constant 0 : i32
    %10 = arith.cmpi slt, %3, %c0_i32_3 : i32
    %11 = vector.broadcast %10 : i1 to vector<1x512xi1>
    %12 = vector.broadcast %11 : vector<1x512xi1> to vector<1x512xi1>
    %13 = arith.xori %9, %12 : vector<1x512xi1>
    %14 = arith.andi %13, %7 : vector<1x512xi1>
    %15 = vector.broadcast %3 : i32 to vector<1x512xi32>
    %16 = arith.addi %5, %15 : vector<1x512xi32>
    %17 = arith.select %14, %16, %5 : vector<1x512xi1>, vector<1x512xi32>
    %c256_i32 = arith.constant 256 : i32
    %c0_i32_4 = arith.constant 0 : i32
    %18 = arith.cmpi eq, %c256_i32, %c0_i32_4 : i32
    %c1_i32_5 = arith.constant 1 : i32
    %19 = arith.select %18, %c1_i32_5, %c256_i32 : i32
    %20 = vector.broadcast %19 : i32 to vector<1x512xi32>
    %21 = arith.remsi %1, %20 : vector<1x512xi32>
    %c0_i32_6 = arith.constant 0 : i32
    %22 = vector.broadcast %c0_i32_6 : i32 to vector<1x512xi32>
    %23 = arith.cmpi ne, %21, %22 : vector<1x512xi32>
    %c0_i32_7 = arith.constant 0 : i32
    %24 = vector.broadcast %c0_i32_7 : i32 to vector<1x512xi32>
    %25 = arith.cmpi slt, %21, %24 : vector<1x512xi32>
    %c0_i32_8 = arith.constant 0 : i32
    %26 = arith.cmpi slt, %19, %c0_i32_8 : i32
    %27 = vector.broadcast %26 : i1 to vector<1x512xi1>
    %28 = vector.broadcast %27 : vector<1x512xi1> to vector<1x512xi1>
    %29 = arith.xori %25, %28 : vector<1x512xi1>
    %30 = arith.andi %29, %23 : vector<1x512xi1>
    %31 = vector.broadcast %19 : i32 to vector<1x512xi32>
    %32 = arith.addi %21, %31 : vector<1x512xi32>
    %33 = arith.select %30, %32, %21 : vector<1x512xi1>, vector<1x512xi32>
    %c17_i32 = arith.constant 17 : i32
    %34 = tpu.dynamic_rotate %0 by %c17_i32 dim 1 : vector<4x512xf32>, i32 -> vector<4x512xf32>
    %c16_i32_9 = arith.constant 16 : i32
    %35 = vector.broadcast %c16_i32_9 : i32 to vector<1x512xi32>
    %36 = arith.cmpi sge, %33, %35 : vector<1x512xi32>
    %c1_i32_10 = arith.constant 1 : i32
    %37 = vector.broadcast %c1_i32_10 : i32 to vector<1x512xi32>
    %38 = arith.cmpi sge, %17, %37 : vector<1x512xi32>
    %39 = arith.andi %36, %38 : vector<1x512xi1>
    %cst = arith.constant 0.000000e+00 : f32
    %40 = vector.broadcast %cst : f32 to vector<4x512xf32>
    %41 = vector.shape_cast %39 : vector<1x512xi1> to vector<1x512xi1>
    %42 = vector.broadcast %41 : vector<1x512xi1> to vector<4x512xi1>
    %43 = arith.select %42, %34, %40 : vector<4x512xi1>, vector<4x512xf32>
    %c495_i32 = arith.constant 495 : i32
    %44 = tpu.dynamic_rotate %0 by %c495_i32 dim 1 : vector<4x512xf32>, i32 -> vector<4x512xf32>
    %c240_i32 = arith.constant 240 : i32
    %45 = vector.broadcast %c240_i32 : i32 to vector<1x512xi32>
    %46 = arith.cmpi slt, %33, %45 : vector<1x512xi32>
    %c14_i32 = arith.constant 14 : i32
    %47 = vector.broadcast %c14_i32 : i32 to vector<1x512xi32>
    %48 = arith.cmpi sle, %17, %47 : vector<1x512xi32>
    %49 = arith.andi %46, %48 : vector<1x512xi1>
    %cst_11 = arith.constant 0.000000e+00 : f32
    %50 = vector.broadcast %cst_11 : f32 to vector<4x512xf32>
    %51 = vector.shape_cast %49 : vector<1x512xi1> to vector<1x512xi1>
    %52 = vector.broadcast %51 : vector<1x512xi1> to vector<4x512xi1>
    %53 = arith.select %52, %44, %50 : vector<4x512xi1>, vector<4x512xf32>
    %c16_i32_12 = arith.constant 16 : i32
    %54 = tpu.dynamic_rotate %0 by %c16_i32_12 dim 1 : vector<4x512xf32>, i32 -> vector<4x512xf32>
    %c16_i32_13 = arith.constant 16 : i32
    %55 = vector.broadcast %c16_i32_13 : i32 to vector<1x512xi32>
    %56 = arith.cmpi sge, %33, %55 : vector<1x512xi32>
    %cst_14 = arith.constant 0.000000e+00 : f32
    %57 = vector.broadcast %cst_14 : f32 to vector<4x512xf32>
    %58 = vector.shape_cast %56 : vector<1x512xi1> to vector<1x512xi1>
    %59 = vector.broadcast %58 : vector<1x512xi1> to vector<4x512xi1>
    %60 = arith.select %59, %54, %57 : vector<4x512xi1>, vector<4x512xf32>
    %c1_i32_15 = arith.constant 1 : i32
    %61 = tpu.dynamic_rotate %0 by %c1_i32_15 dim 1 : vector<4x512xf32>, i32 -> vector<4x512xf32>
    %c1_i32_16 = arith.constant 1 : i32
    %62 = vector.broadcast %c1_i32_16 : i32 to vector<1x512xi32>
    %63 = arith.cmpi sge, %17, %62 : vector<1x512xi32>
    %cst_17 = arith.constant 0.000000e+00 : f32
    %64 = vector.broadcast %cst_17 : f32 to vector<4x512xf32>
    %65 = vector.shape_cast %63 : vector<1x512xi1> to vector<1x512xi1>
    %66 = vector.broadcast %65 : vector<1x512xi1> to vector<4x512xi1>
    %67 = arith.select %66, %61, %64 : vector<4x512xi1>, vector<4x512xf32>
    %68 = tpu.concatenate %43, %0, %53, %60, %67 in 0 : vector<4x512xf32>, vector<4x512xf32>, vector<4x512xf32>, vector<4x512xf32>, vector<4x512xf32> -> vector<20x512xf32>
    %c0_18 = arith.constant 0 : index
    %c0_19 = arith.constant 0 : index
    %69 = vector.load %arg2[%c0_18, %c0_19] : memref<8x20xf32, #tpu.memory_space<vmem>>, vector<8x20xf32>
    %cst_20 = arith.constant dense<0.000000e+00> : vector<8x512xf32>
    %70 = tpu.matmul %69, %68, %cst_20 {dimension_numbers = #tpu.dot_dimension_numbers<[1], [0], [0], [1], [0, 0, 1, 1], [], []>} : vector<8x20xf32>, vector<20x512xf32>, vector<8x512xf32> -> vector<8x512xf32>
    %c0_21 = arith.constant 0 : index
    %c0_22 = arith.constant 0 : index
    %71 = vector.load %arg3[%c0_21, %c0_22] : memref<8x512xf32, #tpu.memory_space<vmem>>, vector<8x512xf32>
    tpu.vector_store %arg3[%c0_21, %c0_22], %70 {strides = array<i32>} : memref<8x512xf32, #tpu.memory_space<vmem>>, vector<8x512xf32>,
    return
  }
  func.func @transform_0(%arg0: i32) -> (i32, i32) {
    %c0_i32 = arith.constant 0 : i32
    %c0_i32_0 = arith.constant 0 : i32
    return %c0_i32, %arg0 : i32, i32
  }
  func.func @transform_1(%arg0: i32) -> (i32, i32) {
    %c0_i32 = arith.constant 0 : i32
    %c0_i32_0 = arith.constant 0 : i32
    %c0_i32_1 = arith.constant 0 : i32
    return %c0_i32, %c0_i32_0 : i32, i32
  }
  func.func @transform_2(%arg0: i32) -> (i32, i32) {
    %c0_i32 = arith.constant 0 : i32
    %c0_i32_0 = arith.constant 0 : i32
    return %c0_i32, %arg0 : i32, i32
  }
}

</mosaic_0001>

<bundles_post_ra>
// kernel: any_module_d_forward.1
= control target key start
LH: loop header
LB: loop body
LE: loop exit
PB: predicated region body
PF: predicated region fallthrough
CT: control target
= control target key end

     0   :  { %s451_s13 = smov 16   ;;  %s452_s14 = smov 1   ;;  %v454_v4 = vmov 0.0   ;;  %v13_v5 = vlaneseq  ;;  %vm656_vm2 = vcmask 1043456   ;;  %s653_s0 = inlined_call_operand.vmem [shape: f32[4,512], index: 0, kind: input, shape index: {}]   ;;  %s654_s1 = inlined_call_operand.vmem [shape: f32[8,20], index: 1, kind: input, shape index: {}]   ;;  %s655_s2 = inlined_call_operand.vmem [shape: f32[8,512], index: 2, kind: output, shape index: {}]  }
   0x1   :  { %v474_v0 = vld [vmem:[%s653_s0 + $0x8] sm:$0xff]  ;;  %v479_v1 = vld [vmem:[%s653_s0] sm:$0xff]  ;;  %s453_s0 = smov 111   ;;  %350 = vmatprep.mubr.f32.mxu0 %v454_v4  ;;  %421 = vmatprep.mubr.f32.mxu1 %v454_v4  ;;  %s455_s15 = smov 17  }
   0x2   :  { %198 = vrot.lane.b32.xlu1 %v474_v0, %s451_s13  ;;  %194 = vrot.lane.b32.xlu0 %v479_v1, %s451_s13  ;;  %v117_v2 = vcombine.high %v474_v0, %v474_v0  ;;  %v116_v3 = vcombine.high %v479_v1, %v479_v1  ;;  %v493_v6 = vand.u32 127, %v13_v5  ;;  %v245_v15 = vcombine.low %v474_v0, %v474_v0  ;;  %v269_v26 = vld [vmem:[%s654_s1] sm:$0xff] }
   0x4   :  { %v15_v7 = vadd.s32 128, %v493_v6  ;;  %v17_v11 = vadd.s32 384, %v493_v6  ;;  %v16_v14 = vadd.s32 256, %v493_v6  ;;  %vm227_vm0 = vcmp.lt.s32.totalorder %v493_v6, 1 }
   0x5   :  { %v22_v16 = vand.u32 15, %v493_v6  ;;  %vm202_vm3 = vcmp.lt.s32.totalorder %v493_v6, 16  ;;  %v70_v28 = vand.u32 255, %v493_v6  ;;  %vm165_vm8 = vcmp.lt.s32.totalorder %v493_v6, 111 }
   0x6   :  { %200 = vrot.lane.b32.xlu1 %v117_v2, %s451_s13  ;;  %196 = vrot.lane.b32.xlu0 %v116_v3, %s451_s13  ;;  %v29_v10 = vand.u32 15, %v15_v7  ;;  %v43_v17 = vand.u32 15, %v17_v11  ;;  %v36_v18 = vand.u32 15, %v16_v14  ;;  %v84_v21 = vand.u32 255, %v16_v14 }
   0x7   :  { %vm510_vm4 = vcmp.ge.s32.totalorder %v22_v16, 1  ;;  %v91_v27 = vand.u32 255, %v17_v11  ;;  %v77_v31 = vand.u32 255, %v15_v7  ;;  %vm552_vm11 = vcmp.ge.s32.totalorder %v70_v28, 16 }
   0x8   :  { %vm499_vm1 = vcmp.ge.s32.totalorder %v29_v10, 1  ;;  %vm514_vm5 = vcmp.ge.s32.totalorder %v43_v17, 1  ;;  %vm518_vm6 = vcmp.ge.s32.totalorder %v36_v18, 1  ;;  %vm523_vm7 = vcmp.ge.s32.totalorder %v84_v21, 16 }
   0x9   :  { %vm544_vm9 = vcmp.lt.s32.totalorder %v91_v27, 240  ;;  %vm548_vm10 = vcmp.le.s32.totalorder %v43_v17, 14  ;;  %vm559_vm12 = vcmp.lt.s32.totalorder %v77_v31, 240  ;;  %vm563_vm13 = vcmp.le.s32.totalorder %v29_v10, 14 }
   0xa   :  { %221 = vrot.lane.b32.xlu1 %v116_v3, %s452_s14  ;;  %219 = vrot.lane.b32.xlu0 %v479_v1, %s452_s14  ;;  %vm573_vm14 = vcmp.le.s32.totalorder %v22_v16, 14  ;;  %vm181_vm15 = vmand %vm544_vm9, %vm548_vm10  ;;  %vm681_vm9 = vcmask 1043456   ;;  %v244_v17 = vcombine.low %v479_v1, %v479_v1 }
   0xb   :  { %vm682_vm10 = vmmov %vm681_vm9 }
   0xe   :  { %225 = vrot.lane.b32.xlu1 %v117_v2, %s452_s14  ;;  %223 = vrot.lane.b32.xlu0 %v474_v0, %s452_s14 }
  0x12   :  { %159 = vrot.lane.b32.xlu1 %v116_v3, %s453_s0  ;;  %157 = vrot.lane.b32.xlu0 %v479_v1, %s453_s0 }
  0x16   :  { %163 = vrot.lane.b32.xlu1 %v117_v2, %s453_s0  ;;  %161 = vrot.lane.b32.xlu0 %v474_v0, %s453_s0 }
  0x1a   :  { %122 = vrot.lane.b32.xlu1 %v116_v3, %s455_s15  ;;  %120 = vrot.lane.b32.xlu0 %v479_v1, %s455_s15 }
  0x1e   :  { %126 = vrot.lane.b32.xlu1 %v117_v2, %s455_s15  ;;  %124 = vrot.lane.b32.xlu0 %v474_v0, %s455_s15 }
  0x74   :  { %v199_v8 = vpop.permute.xlu1 %198  ;;  %v195_v9 = vpop.permute.xlu0 %194 }
  0x78   :  { %v201_v12 = vpop.permute.xlu1 %200  ;;  %v197_v13 = vpop.permute.xlu0 %196 }
  0x79   :  { %v204_v36 = vsel %vm202_vm3, %v197_v13, %v199_v8  ;;  %v206_v43 = vsel %vm202_vm3, %v201_v12, %v195_v9  ;;  %v203_v48 = vsel %vm202_vm3, %v199_v8, %v201_v12  ;;  %v205_v49 = vsel %vm202_vm3, %v195_v9, %v197_v13  ;;  %vm179_vm3 = vmand %vm559_vm12, %vm563_vm13 }
  0x7a   :  { %v217_v50 = vsel %vm523_vm7, %v204_v36, 0.0  ;;  %v215_v53 = vsel %vm552_vm11, %v206_v43, 0.0  ;;  %v255_v55 = vrot.slane %v203_v48, 4  ;;  %v253_v56 = vrot.slane %v205_v49, 4  ;;  %vm683_vm12 = vmmov %vm681_vm9 }
  0x7b   :  { %v254_v57 = vrot.slane %v217_v50, 4  ;;  %v252_v2 = vrot.slane %v215_v53, 4  ;;  %vm684_vm13 = vmmov %vm681_vm9 }
  0x7c   :  { %v222_v19 = vpop.permute.xlu1 %221  ;;  %v220_v20 = vpop.permute.xlu0 %219 }
  0x7d   :  { %v230_v22 = vsel %vm227_vm0, %v220_v20, %v222_v19 }
  0x7e   :  { %v241_v23 = vsel %vm499_vm1, %v230_v22, 0.0 }
  0x7f   :  { %436 = vmatprep.subr.msk.mxu0 %vm656_vm2, %v241_v23 }
  0x80   :  { %v226_v29 = vpop.permute.xlu1 %225  ;;  %v224_v30 = vpop.permute.xlu0 %223 }
  0x81   :  { %v231_v33 = vsel %vm227_vm0, %v226_v29, %v220_v20  ;;  %v229_v34 = vsel %vm227_vm0, %v222_v19, %v224_v30  ;;  %v228_v35 = vsel %vm227_vm0, %v224_v30, %v226_v29  ;;  %vm585_vm0 = vcmp.le.s32.totalorder %v36_v18, 14 }
  0x82   :  { %v240_v37 = vsel %vm510_vm4, %v231_v33, 0.0  ;;  %v243_v38 = vsel %vm514_vm5, %v228_v35, 0.0  ;;  %v242_v39 = vsel %vm518_vm6, %v229_v34, 0.0 }
  0x83   :  { %437 = vmatpush1.msk.msra.mxu0 %vm656_vm2, %v240_v37  ;;  %439 = vmatprep.subr.msk.mxu1 %vm656_vm2, %v243_v38 }
  0x84   :  { %v160_v44 = vpop.permute.xlu1 %159  ;;  %440 = vmatpush1.msk.msra.mxu1 %vm656_vm2, %v242_v39  ;;  %v158_v45 = vpop.permute.xlu0 %157  ;;  %vm128_vm2 = vcmp.lt.s32.totalorder %v493_v6, 17 }
  0x85   :  { %v168_v52 = vsel %vm165_vm8, %v158_v45, %v160_v44 }
  0x86   :  { %v190_v60 = vsel %vm573_vm14, %v168_v52, 0.0  ;;  %vm685_vm14 = vmmov %vm681_vm9 }
  0x87   :  { %v265_v12 = vsel %vm684_vm13, %v190_v60, %v252_v2 }
  0x88   :  { %v164_v58 = vpop.permute.xlu1 %163  ;;  %v162_v59 = vpop.permute.xlu0 %161 }
  0x89   :  { %v169_v61 = vsel %vm165_vm8, %v164_v58, %v158_v45  ;;  %v166_v62 = vsel %vm165_vm8, %v162_v59, %v164_v58  ;;  %v167_v63 = vsel %vm165_vm8, %v160_v44, %v162_v59  ;;  %vm141_vm8 = vmand %vm552_vm11, %vm510_vm4 }
  0x8a   :  { %v193_v3 = vsel %vm181_vm15, %v169_v61, 0.0  ;;  %v191_v4 = vsel %vm179_vm3, %v167_v63, 0.0  ;;  %v192_v5 = vsel %vm585_vm0, %v166_v62, 0.0  ;;  %vm143_vm15 = vmand %vm523_vm7, %vm518_vm6 }
  0x8b   :  { %v266_v7 = vsel %vm681_vm9, %v191_v4, %v253_v56  ;;  %v268_v8 = vsel %vm682_vm10, %v193_v3, %v255_v55  ;;  %v267_v9 = vsel %vm683_vm12, %v192_v5, %v254_v57  ;;  %vm686_vm4 = vmmov %vm681_vm9 }
  0x8c   :  { %v123_v10 = vpop.permute.xlu1 %122  ;;  %314 = vmatprep.subr.mxu0 %v266_v7  ;;  %385 = vmatprep.subr.mxu1 %v268_v8  ;;  %v121_v11 = vpop.permute.xlu0 %120  ;;  %vm687_vm6 = vmmov %vm686_vm4 }
  0x8d   :  { %v131_v13 = vsel %vm128_vm2, %v121_v11, %v123_v10  ;;  %315 = vmatpush1.msra.mxu0 %v265_v12  ;;  %386 = vmatpush1.msra.mxu1 %v267_v9  ;;  %vm688_vm7 = vmmov %vm686_vm4 }
  0x8e   :  { %v154_v14 = vsel %vm499_vm1, %v131_v13, 0.0  ;;  %vm270_vm1 = vcmask 162816  }
  0x8f   :  { %v262_v16 = vsel %vm685_vm14, %v154_v14, %v479_v1 }
  0x90   :  { %v127_v18 = vpop.permute.xlu1 %126  ;;  %316 = vmatprep.subr.mxu0 %v262_v16  ;;  %v125_v19 = vpop.permute.xlu0 %124 }
  0x91   :  { %v132_v20 = vsel %vm128_vm2, %v127_v18, %v121_v11  ;;  %v129_v21 = vsel %vm128_vm2, %v125_v19, %v127_v18  ;;  %v130_v22 = vsel %vm128_vm2, %v123_v10, %v125_v19 }
  0x92   :  { %v153_v23 = vsel %vm141_vm8, %v132_v20, 0.0  ;;  %v155_v24 = vsel %vm143_vm15, %v130_v22, 0.0  ;;  %v156_v1 = vsel %vm514_vm5, %v129_v21, 0.0 }
  0x93   :  { %v261_v27 = vsel %vm686_vm4, %v153_v23, %v244_v17  ;;  %v264_v28 = vsel %vm687_vm6, %v156_v1, %v474_v0  ;;  %v263_v29 = vsel %vm688_vm7, %v155_v24, %v245_v15 }
  0x94   :  { %317 = vmatpush1.msra.mxu0 %v261_v27  ;;  %387 = vmatprep.subr.mxu1 %v264_v28 }
  0x95   :  { %438 = vmatmul.mubr.msk.f32.vlgmr.msra.gmra.mxu0 %vm270_vm1, %v269_v26  ;;  %388 = vmatpush1.msra.mxu1 %v263_v29 }
  0x96   :  { %441 = vmatmul.mubr.msk.f32.vlgmr.msra.gmra.mxu1 %vm270_vm1, %v269_v26 }
 0x155   :  { %v352_v6 = vpop.f32.mrf.mxu0 }
 0x156   :  { %428 = vst [vmem:[%s655_s2] sm:$0xff] %v352_v6  ;;  %v423_v25 = vpop.f32.mrf.mxu1 }
 0x157   :  { %430 = vst [vmem:[%s655_s2 + $0x10] sm:$0xff] %v423_v25  ;;  %v354_v30 = vpop.f32.mrf.mxu0 }
 0x158   :  { %429 = vst [vmem:[%s655_s2 + $0x8] sm:$0xff] %v354_v30  ;;  %v425_v0 = vpop.f32.mrf.mxu1 }
 0x159   :  { %431 = vst [vmem:[%s655_s2 + $0x18] sm:$0xff] %v425_v0 }

</bundles_post_ra>
